<compile_context>
chip_gen: v7x
topology: tpu7x:2x2x1
jax: 0.10.0
libtpu: 0.0.40
codegen_flags: <defaults>
</compile_context>

<pallas_src>
import numpy as np
import jax
import jax.numpy as jnp
from jax.experimental import pallas as pl
from jax.experimental.pallas import tpu as pltpu


_BLOCK_T_CANDIDATES = (1024, 512, 256, 128)   # all divide _PE_PAD
_PE_PAD = 1024                                # PE time axis padded to this multiple


def _round_up(x, m):
    return ((x + m - 1) // m) * m


def _num_tensorcores():
    """Best-effort TensorCore count per chip (v7x: 2). Defaults to 1 if unknown."""
    try:
        info = pltpu.get_tpu_info()
        for attr in ("num_cores", "core_count", "num_tensorcores", "tensorcore_count"):
            v = getattr(info, attr, None)
            if isinstance(v, int) and v > 0:
                return v
    except Exception:
        pass
    return 1


# ---------------------------------------------------------------------------
# Positional-encoding buffers
# ---------------------------------------------------------------------------
def make_position_encoding(d_model, max_len=5000):
    """Canonical AbsolutePositionEncoding buffer, shape (max_len, 1, d_model) (numpy)."""
    position = np.arange(0, max_len, dtype=np.float32)[:, None]               # (max_len, 1)
    div_term = np.exp(
        np.arange(0, d_model, 2, dtype=np.float32) * (-np.log(10000.0) / d_model)
    )
    pe = np.zeros((max_len, d_model), dtype=np.float32)
    pe[:, 0::2] = np.sin(position * div_term)
    if d_model % 2 == 1:
        pe[:, 1::2] = np.cos(position * div_term[:-1])
    else:
        pe[:, 1::2] = np.cos(position * div_term)
    return pe[:, None, :]                                                     # (max_len, 1, d_model)


def make_kernel_pe(pe_buffer, batch, num_neurons, dtype=jnp.float32):
    """One-time init transpose: (max_len, 1, d_model) -> ((B*N), padded_max_len).

    Returns (pe2d, valid_len).  The time axis is zero-padded to a _PE_PAD multiple so
    that every 128-aligned lane block the kernel reads stays fully in-bounds.
    """
    max_len, _, d_model = pe_buffer.shape
    assert d_model == batch * num_neurons, (
        f"d_model ({d_model}) must equal batch*num_neurons ({batch * num_neurons})"
    )
    pe_t = np.asarray(pe_buffer)[:, 0, :].T                                   # (d_model, max_len)
    padded = _round_up(max_len, _PE_PAD)
    if padded != max_len:
        pe_t = np.pad(pe_t, ((0, 0), (0, padded - max_len)))
    return jnp.asarray(np.ascontiguousarray(pe_t), dtype=dtype), max_len


# ---------------------------------------------------------------------------
# Kernel: memory-bound elementwise add on lane-dense (block_m, block_t) tiles
# ---------------------------------------------------------------------------
def _add_pe_kernel(x_ref, pe_ref, o_ref):
    o_ref[...] = x_ref[...] + pe_ref[...]


def spike_position_encoding(x, pe2d, valid_len, *,
                            block_bytes_target=4 * 1024 * 1024,
                            num_tensorcores=None,
                            alias_input=False):
    """x: (B, N, T); pe2d/valid_len from make_kernel_pe. Returns (B, N, T)."""
    batch, num_neurons, time_steps = x.shape
    m_rows = batch * num_neurons
    pm, padded_len = pe2d.shape
    assert pm == m_rows, (
        f"PE buffer was built for d_model={pm}, got batch*num_neurons={m_rows}"
    )
    assert time_steps <= valid_len, (
        f"time_steps ({time_steps}) exceeds positional-encoding max_len ({valid_len})"
    )
    itemsize = x.dtype.itemsize
    sub = 16 if itemsize < 4 else 8          # sublane multiple (bf16 rows pack in pairs)

    # Lane (T) block: largest 128-multiple candidate <= round_up(T, 128).  All
    # candidates divide _PE_PAD, so grid_t * block_t <= padded_len (pe DMAs in-bounds).
    t_ru = max(128, _round_up(time_steps, 128))
    block_t = next(c for c in _BLOCK_T_CANDIDATES if c <= t_ru)

    # Sublane (M) block: multiple of `sub`, ~block_bytes_target per stream per buffer.
    # 3 streams x 2 buffers x <=4 MiB = <=24 MiB total — safe on v7x's 64 MiB VMEM.
    rows_target = max(sub, block_bytes_target // (block_t * itemsize))
    block_m = min(_round_up(m_rows, sub), (rows_target // sub) * sub)
    block_m = max(block_m, sub)

    grid_m = pl.cdiv(m_rows, block_m)
    grid_t = pl.cdiv(time_steps, block_t)

    # Device-conditional split: only multi-TC parts (v7x) benefit from >=2 grid steps.
    cores = num_tensorcores if num_tensorcores is not None else _num_tensorcores()
    if cores >= 2 and grid_m * grid_t < 2:
        if block_t >= 256:
            block_t //= 2                     # still a 128-multiple dividing _PE_PAD
        elif block_m >= 2 * sub:
            block_m = _round_up(block_m // 2, sub)
        grid_m = pl.cdiv(m_rows, block_m)
        grid_t = pl.cdiv(time_steps, block_t)

    per_block_bytes = block_m * block_t * itemsize
    vmem_limit = int(min(48 << 20, max(3 * 2 * per_block_bytes + (2 << 20), 16 << 20)))

    block = (block_m, block_t)
    idx = lambda i, j: (i, j)

    x2d = x.reshape(m_rows, time_steps)       # free, contiguous view of (B, N, T)

    out2d = pl.pallas_call(
        _add_pe_kernel,
        out_shape=jax.ShapeDtypeStruct((m_rows, time_steps), x.dtype),
        grid_spec=pl.GridSpec(
            grid=(grid_m, grid_t),
            in_specs=[
                pl.BlockSpec(block, idx),     # x  (M, T)
                pl.BlockSpec(block, idx),     # pe (M, padded_len): first T lanes used
            ],
            out_specs=pl.BlockSpec(block, idx),
        ),
        compiler_params=pltpu.CompilerParams(
            dimension_semantics=("parallel", "parallel"),
            vmem_limit_bytes=vmem_limit),
        cost_estimate=pl.CostEstimate(
            flops=m_rows * time_steps,
            transcendentals=0,
            bytes_accessed=3 * m_rows * time_steps * itemsize),
        # Opt-in only: without caller-side donation of x, aliasing forces XLA to make
        # a defensive copy of x (extra HBM read+write on a bandwidth-bound op).
        input_output_aliases=({0: 0} if alias_input else {}),
    )(x2d, pe2d)

    return out2d.reshape(batch, num_neurons, time_steps)


# ---------------------------------------------------------------------------
if __name__ == "__main__":
    B, N = 2, 16                  # d_model must equal B*N
    d_model = B * N               # 32
    max_len = 5000

    pe_buffer = make_position_encoding(d_model, max_len=max_len)   # (max_len, 1, d_model)
    pe2d, valid_len = make_kernel_pe(pe_buffer, B, N)               # (32, 5120), 5000

    key = jax.random.PRNGKey(0)
    # Exercise both the partial final lane block (T=200) and the clean 128-multiple
    # path (T=512).
    for T in (200, 512):
        key, sub = jax.random.split(key)
        x = jax.random.normal(sub, (B, N, T), dtype=jnp.float32)

        # Pure-numpy reference of the (intended) forward pass.
        x_np = np.asarray(x)
        ref2d = x_np.transpose(2, 0, 1).reshape(T, d_model) + np.asarray(pe_buffer)[:T, 0, :]
        ref = ref2d.reshape(T, B, N).transpose(1, 2, 0)              # (B, N, T)

        out = spike_position_encoding(x, pe2d, valid_len)
        out = jax.block_until_ready(out)

        assert out.shape == (B, N, T), out.shape
        assert out.dtype == jnp.float32, out.dtype
        np.testing.assert_allclose(np.asarray(out), ref, rtol=1e-6, atol=1e-6)

    print("KERNEL_OK")
</pallas_src>

<mosaic_0001>
module attributes {stable_mosaic.version = 11 : i64} {
  func.func @_add_pe_kernel(%arg0: i32, %arg1: i32, %arg2: memref<32x256xf32, #tpu.memory_space<vmem>>, %arg3: memref<32x256xf32, #tpu.memory_space<vmem>>, %arg4: memref<32x256xf32, #tpu.memory_space<vmem>>) attributes {dimension_semantics = [#tpu.dimension_semantics<parallel>, #tpu.dimension_semantics<parallel>], iteration_bounds = array<i64: 1, 1>, scalar_prefetch = 0 : i64, scratch_operands = 0 : i64, tpu.core_type = #tpu.core_type<tc>, window_params = [{transform_indices = @transform_0, window_bounds = array<i64: 32, 256>}, {transform_indices = @transform_1, window_bounds = array<i64: 32, 256>}, {transform_indices = @transform_2, window_bounds = array<i64: 32, 256>}]} {
    %c0 = arith.constant 0 : index
    %c0_0 = arith.constant 0 : index
    %0 = vector.load %arg2[%c0, %c0_0] : memref<32x256xf32, #tpu.memory_space<vmem>>, vector<32x256xf32>
    %c0_1 = arith.constant 0 : index
    %c0_2 = arith.constant 0 : index
    %1 = vector.load %arg3[%c0_1, %c0_2] : memref<32x256xf32, #tpu.memory_space<vmem>>, vector<32x256xf32>
    %2 = arith.addf %0, %1 : vector<32x256xf32>
    %c0_3 = arith.constant 0 : index
    %c0_4 = arith.constant 0 : index
    %3 = vector.load %arg4[%c0_3, %c0_4] : memref<32x256xf32, #tpu.memory_space<vmem>>, vector<32x256xf32>
    tpu.vector_store %arg4[%c0_3, %c0_4], %2 {strides = array<i32>} : memref<32x256xf32, #tpu.memory_space<vmem>>, vector<32x256xf32>,
    return
  }
  func.func @transform_0(%arg0: i32, %arg1: i32) -> (i32, i32) {
    %c0_i32 = arith.constant 0 : i32
    return %arg0, %arg1 : i32, i32
  }
  func.func @transform_1(%arg0: i32, %arg1: i32) -> (i32, i32) {
    %c0_i32 = arith.constant 0 : i32
    return %arg0, %arg1 : i32, i32
  }
  func.func @transform_2(%arg0: i32, %arg1: i32) -> (i32, i32) {
    %c0_i32 = arith.constant 0 : i32
    return %arg0, %arg1 : i32, i32
  }
}

</mosaic_0001>

<bundles_post_ra>
// kernel: tpu_custom_call.1
= control target key start
LH: loop header
LB: loop body
LE: loop exit
PB: predicated region body
PF: predicated region fallthrough
CT: control target
= control target key end

     0   :  { %7 = vsyncpa [#allocation3], 0  ;;  %s236_s0 = inlined_call_operand.hbm [shape: f32[32,200], index: 0, kind: input, shape index: {}]   ;;  %s237_s1 = inlined_call_operand.hbm [shape: f32[32,5120], index: 1, kind: input, shape index: {}]   ;;  %s238_s2 = inlined_call_operand.hbm [shape: f32[32,200], index: 2, kind: output, shape index: {}]  }
   0x1   :  { %8 = vsyncpa [#allocation6], 0 }
   0x2   :  { %9 = vsyncpa [#allocation4], 0  ;;  %s168_s9 = smov [#allocation2]   ;;  %s96_s13 = scalar_lea.hbm %s236_s0, 1024 }
   0x3   :  { %s15_s10 = sshll.u32 %s168_s9, 4  ;;  %p97_p0 = scmp.ne.s32.totalorder %s236_s0, %s96_s13  ;;  %s16_s10 = int_to_ptr.vmem [resolvable:$true] %s15_s10 }
   0x4   :  { %p100_p1 = scmp.lt.u32.totalorder %s96_s13, %s236_s0 }
   0x6   :  { %p102_p2 = pnand %p100_p1, %p97_p0 }
   0x8   :  { %105 = shalt.err (!%p102_p2)
}
   0x9   :  { %s106_s18 = scalar_lea.vmem %s16_s10, 1024  ;;  %p111_p4 = scmp.lt.s32.totalorder %s16_s10, %s16_s10 }
   0xa   :  { %p107_p3 = scmp.ne.s32.totalorder %s16_s10, %s106_s18  ;;  %p112_p5 = scmp.lt.s32.totalorder %s106_s18, %s106_s18 }
   0xc   :  { %p113_p6 = por %p112_p5, %p111_p4 }
   0xe   :  { %p114_p7 = pnand %p113_p6, %p107_p3 }
  0x10   :  { %117 = shalt.err (!%p114_p7)
}
  0x11   :  { %s169_s19 = smov 256   ;;  %s170_s20 = smov 16  }
  0x12   :  { %21 = dma.hbm_to_vmem [thread:$0]  %s236_s0, 1024, %s16_s10, [#allocation3], %s169_s19, %s169_s19, %s170_s20  }
  0x13   :  { %s171_s23 = smov [#allocation5]   ;;  %s118_s27 = scalar_lea.hbm %s237_s1, 1024 }
  0x14   :  { %s27_s24 = sshll.u32 %s171_s23, 4  ;;  %p119_p8 = scmp.ne.s32.totalorder %s237_s1, %s118_s27  ;;  %s28_s24 = int_to_ptr.vmem [resolvable:$true] %s27_s24 }
  0x15   :  { %s120_s4 = scalar_lea.hbm %s237_s1, 20480  ;;  %p122_p10 = scmp.lt.u32.totalorder %s118_s27, %s237_s1 }
  0x16   :  { %p121_p9 = scmp.lt.u32.totalorder %s120_s4, %s118_s27 }
  0x18   :  { %p123_p11 = por %p122_p10, %p121_p9 }
  0x1a   :  { %p124_p12 = pnand %p123_p11, %p119_p8 }
  0x1c   :  { %127 = shalt.err (!%p124_p12)
}
  0x1d   :  { %s128_s0 = scalar_lea.vmem %s28_s24, 1024  ;;  %p133_p0 = scmp.lt.s32.totalorder %s28_s24, %s28_s24 }
  0x1e   :  { %p129_p13 = scmp.ne.s32.totalorder %s28_s24, %s128_s0  ;;  %p134_p1 = scmp.lt.s32.totalorder %s128_s0, %s128_s0 }
  0x20   :  { %p135_p2 = por %p134_p1, %p133_p0 }
  0x22   :  { %p136_p3 = pnand %p135_p2, %p129_p13 }
  0x24   :  { %139 = shalt.err (!%p136_p3)
}
  0x25   :  { %s172_s7 = smov 5120  }
  0x26   :  { %33 = dma.hbm_to_vmem [thread:$0]  %s237_s1, 1024, %s28_s24, [#allocation6], %s172_s7, %s169_s19, %s170_s20  }
  0x27   :  { %162 = dma.done.wait [#allocation3], 1024  }
  0x28   :  { %163 = vsyncadd [#allocation3], 4294966272 }
  0x29   :  { %164 = dma.done.wait [#allocation6], 1024  }
  0x2a   :  { %165 = vsyncadd [#allocation6], 4294966272  ;;  %v40_v0 = vld [vmem:[#allocation2] sm:$0xff]  ;;  %v41_v2 = vld [vmem:[#allocation2 + $0x8] sm:$0xff]  ;;  %s173_s1 = smov [#allocation7]  }
  0x2b   :  { %v48_v1 = vld [vmem:[#allocation5] sm:$0xff]  ;;  %v49_v4 = vld [vmem:[#allocation5 + $0x8] sm:$0xff]  ;;  %v42_v5 = vld [vmem:[#allocation2 + $0x10] sm:$0xff]  ;;  %s77_s10 = sshll.u32 %s173_s1, 4  ;;  %s78_s10 = int_to_ptr.vmem [resolvable:$true] %s77_s10 }
  0x2c   :  { %v56_v3 = vadd.f32 %v48_v1, %v40_v0  ;;  %v50_v6 = vld [vmem:[#allocation5 + $0x10] sm:$0xff]  ;;  %v57_v7 = vadd.f32 %v49_v4, %v41_v2  ;;  %v43_v9 = vld [vmem:[#allocation2 + $0x18] sm:$0xff]  ;;  %v44_v11 = vld [vmem:[#allocation2 + $0x20] sm:$0xff]  ;;  %s140_s11 = scalar_lea.vmem %s78_s10, 1024  ;;  %p145_p5 = scmp.lt.s32.totalorder %s78_s10, %s78_s10 }
  0x2d   :  { %v58_v8 = vadd.f32 %v50_v6, %v42_v5  ;;  %v51_v10 = vld [vmem:[#allocation5 + $0x18] sm:$0xff]  ;;  %v52_v13 = vld [vmem:[#allocation5 + $0x20] sm:$0xff]  ;;  %v45_v14 = vld [vmem:[#allocation2 + $0x28] sm:$0xff]  ;;  %p141_p4 = scmp.ne.s32.totalorder %s78_s10, %s140_s11  ;;  %p146_p6 = scmp.lt.s32.totalorder %s140_s11, %s140_s11 }
  0x2e   :  { %64 = vst [vmem:[#allocation7] sm:$0xff] %v56_v3  ;;  %v59_v12 = vadd.f32 %v51_v10, %v43_v9  ;;  %v53_v15 = vld [vmem:[#allocation5 + $0x28] sm:$0xff]  ;;  %65 = vst [vmem:[#allocation7 + $0x8] sm:$0xff] %v57_v7  ;;  %v60_v16 = vadd.f32 %v52_v13, %v44_v11  ;;  %v46_v18 = vld [vmem:[#allocation2 + $0x30] sm:$0xff] }
  0x2f   :  { %66 = vst [vmem:[#allocation7 + $0x10] sm:$0xff] %v58_v8  ;;  %v61_v17 = vadd.f32 %v53_v15, %v45_v14  ;;  %v54_v19 = vld [vmem:[#allocation5 + $0x30] sm:$0xff]  ;;  %v47_v20 = vld [vmem:[#allocation2 + $0x38] sm:$0xff]  ;;  %p147_p7 = por %p146_p6, %p145_p5 }
  0x30   :  { %67 = vst [vmem:[#allocation7 + $0x18] sm:$0xff] %v59_v12  ;;  %v62_v21 = vadd.f32 %v54_v19, %v46_v18  ;;  %v55_v22 = vld [vmem:[#allocation5 + $0x38] sm:$0xff]  ;;  %68 = vst [vmem:[#allocation7 + $0x20] sm:$0xff] %v60_v16 }
  0x31   :  { %69 = vst [vmem:[#allocation7 + $0x28] sm:$0xff] %v61_v17  ;;  %v63_v23 = vadd.f32 %v55_v22, %v47_v20  ;;  %p148_p8 = pnand %p147_p7, %p141_p4 }
  0x32   :  { %70 = vst [vmem:[#allocation7 + $0x30] sm:$0xff] %v62_v21 }
  0x33   :  { %71 = vst [vmem:[#allocation7 + $0x38] sm:$0xff] %v63_v23 }
  0x34   :  { %151 = shalt.err (!%p148_p8)
}
  0x35   :  { %s152_s14 = scalar_lea.hbm %s238_s2, 1024 }
  0x36   :  { %p153_p9 = scmp.ne.s32.totalorder %s238_s2, %s152_s14  ;;  %p156_p10 = scmp.lt.u32.totalorder %s152_s14, %s238_s2 }
  0x38   :  { %p158_p11 = pnand %p156_p10, %p153_p9 }
  0x3a   :  { %161 = shalt.err (!%p158_p11)
}
  0x3b   :  { %83 = dma.vmem_to_hbm [thread:$0]  %s78_s10, 1024, %s238_s2, [#allocation4], %s169_s19, %s169_s19, %s170_s20  }
  0x3c   :  { %166 = dma.done.wait [#allocation4], 1024  }
  0x3d   :  { %167 = vsyncadd [#allocation4], 4294966272 }
  0x3e   :  { %87 = vsyncpa [#allocation3], 1 }
  0x3f   :  { %88 = vsyncpa [#allocation6], 1 }
  0x40   :  { %89 = vsyncpa [#allocation4], 1 }

</bundles_post_ra>
